<compile_context>
chip_gen: v5e
topology: v5e:2x2
jax: 0.10.0
libtpu: 0.0.40
codegen_flags: <defaults>
</compile_context>

<pallas_src>
import functools
import math

import jax
import jax.numpy as jnp
from jax import lax
from jax.experimental import pallas as pl
from jax.experimental.pallas import tpu as pltpu


def _round_up(x, m):
    return ((x + m - 1) // m) * m


def _loss_kernel(xh_ref, xy_ref, basis_ref, out_ref, ch_ref, cy_ref, *,
                 distance_metric, tf_rows, tc_rows, hop, n_freq, num_frames):
    """One grid step = one batch row x one tile of `tf_rows` hop blocks.

    Frames are assembled in-kernel (frame f = hop rows f and f+1); the hop row
    straddling the previous tile is carried in VMEM scratch (ch_ref / cy_ref).
    """
    i = pl.program_id(1)

    @pl.when(i == 0)
    def _():
        out_ref[...] = jnp.zeros_like(out_ref)

    nb = 2 * n_freq - 2                       # packed basis width (= n_fft = 128)
    bt = basis_ref[0:hop, :]                  # basis rows for samples 0 .. hop-1
    bb = basis_ref[hop:2 * hop, :]            # basis rows for samples hop .. 2*hop-1

    lane = lax.broadcasted_iota(jnp.int32, (tc_rows, nb), 1)
    row = lax.broadcasted_iota(jnp.int32, (tc_rows, nb), 0)
    keep_roll = (lane != 0) & (lane != n_freq - 1)   # drop wrapped re_64 / re_0
    lane_ok = lane < n_freq                          # real bins live in lanes 0..64
    frame0 = i * tf_rows - 1                         # frame index of local row 0
    eps = jnp.float32(1e-14)

    def power(first, second):
        # |STFT|^2 + eps of frames [first | second] through the packed basis:
        # matmul lanes 0..64 hold re_k, lanes 65..127 hold im_{k-64}; the roll
        # (64 == -64 mod 128, XLU slot) brings im_k^2 on top of re_k^2.
        ri = (jnp.dot(first, bt, preferred_element_type=jnp.float32)
              + jnp.dot(second, bb, preferred_element_type=jnp.float32))
        sq = ri * ri
        swapped = pltpu.roll(sq, shift=n_freq - 1, axis=1)
        return sq + jnp.where(keep_roll, swapped, 0.0) + eps

    total = jnp.zeros((8, nb), jnp.float32)
    for c in range(tf_rows // tc_rows):       # <=128-row chunks: bounded vreg pressure
        lo = c * tc_rows
        rows_h = xh_ref[0, lo:lo + tc_rows, :]          # second frame halves
        rows_y = xy_ref[0, lo:lo + tc_rows, :]
        if c == 0:
            prev_h = ch_ref[7:8, :]                     # carried from previous tile
            prev_y = cy_ref[7:8, :]
        else:
            prev_h = xh_ref[0, lo - 1:lo, :]
            prev_y = xy_ref[0, lo - 1:lo, :]
        first_h = jnp.concatenate([prev_h, rows_h[:-1]], axis=0)   # first halves
        first_y = jnp.concatenate([prev_y, rows_y[:-1]], axis=0)

        p_h = power(first_h.astype(jnp.bfloat16), rows_h.astype(jnp.bfloat16))
        p_y = power(first_y.astype(jnp.bfloat16), rows_y.astype(jnp.bfloat16))

        # log-magnitude distance; single log via log-of-ratio (the 0.5 of
        # log(sqrt(p)) is folded into the host-side normalizer).
        dl = jnp.log(p_h * pl.reciprocal(p_y, approx=True))
        contrib = dl * dl if distance_metric == 'l2' else jnp.abs(dl)

        f_idx = frame0 + lo + row
        valid = (f_idx >= 0) & (f_idx < num_frames) & lane_ok
        contrib = jnp.where(valid, contrib, 0.0)
        total = total + contrib.reshape(tc_rows // 8, 8, nb).sum(axis=0)

    out_ref[...] += total[None]

    # Carry this tile's trailing hop rows for the next tile's first frame.
    ch_ref[...] = xh_ref[0, tf_rows - 8:tf_rows, :]
    cy_ref[...] = xy_ref[0, tf_rows - 8:tf_rows, :]


def log_stft_magnitude_loss(y_hat, y, *, distance_metric='l2',
                            n_fft=128, hop_length=64):
    if distance_metric not in ('l1', 'l2'):
        raise ValueError("distance_metric must be one of ['l1', 'l2']")
    if n_fft != 2 * hop_length:
        raise ValueError("kernel assumes 50% frame overlap (n_fft == 2 * hop)")

    y_hat = jnp.squeeze(y_hat, -1).astype(jnp.float32)
    y = jnp.squeeze(y, -1).astype(jnp.float32)
    B, T = y.shape
    if T < n_fft:
        raise ValueError("signal shorter than one STFT frame")

    hop = hop_length
    num_frames = (T - n_fft) // hop + 1
    num_hops = num_frames + 1            # hop blocks actually consumed
    n_freq = n_fft // 2 + 1              # 65
    nb = 2 * n_freq - 2                  # 128 packed lanes: [re 0..64 | im 1..63]

    # --- tile sizing: tf_rows hop rows per grid step, tc_rows-row chunks inside.
    if num_hops > 128:
        tf_rows = min(512, (num_hops // 128) * 128)
        tc_rows = 128
        pad_rows = 0                     # last tile may be a partial edge block
    else:
        tf_rows = _round_up(num_hops, 8)
        tc_rows = tf_rows
        pad_rows = tf_rows - num_hops
    n_tiles = pl.cdiv(num_hops + pad_rows, tf_rows)

    # --- hop-block view of the raw signal (free reshape when T == num_hops*hop).
    need = num_hops * hop

    def to_hops(x):
        xs = x if need == T else x[:, :need]
        xb = xs.reshape(B, num_hops, hop)
        if pad_rows:
            xb = jnp.pad(xb, ((0, 0), (0, pad_rows), (0, 0)))
        return xb

    xh = to_hops(y_hat)
    xy = to_hops(y)

    # --- packed window-folded real-DFT basis: diag(hann) @ [cos k=0..64 | sin k=1..63].
    n = jnp.arange(n_fft, dtype=jnp.float32)
    window = 0.5 * (1.0 - jnp.cos(2.0 * math.pi * n / n_fft))     # periodic Hann
    kf = jnp.arange(n_freq, dtype=jnp.float32)
    ang = -2.0 * math.pi * n[:, None] * kf[None, :] / n_fft
    cos_b = window[:, None] * jnp.cos(ang)                        # (n_fft, 65)
    sin_b = (window[:, None] * jnp.sin(ang))[:, 1:n_freq - 1]     # (n_fft, 63)
    basis = jnp.concatenate([cos_b, sin_b], axis=1).astype(jnp.bfloat16)

    kernel = functools.partial(
        _loss_kernel, distance_metric=distance_metric, tf_rows=tf_rows,
        tc_rows=tc_rows, hop=hop, n_freq=n_freq, num_frames=num_frames)

    partial_sums = pl.pallas_call(
        kernel,
        out_shape=jax.ShapeDtypeStruct((B, 8, nb), jnp.float32),
        grid=(B, n_tiles),
        in_specs=[
            pl.BlockSpec((1, tf_rows, hop), lambda b, i: (b, i, 0)),   # y_hat hop blocks
            pl.BlockSpec((1, tf_rows, hop), lambda b, i: (b, i, 0)),   # y hop blocks
            pl.BlockSpec((n_fft, nb), lambda b, i: (0, 0)),            # packed basis
        ],
        out_specs=pl.BlockSpec((1, 8, nb), lambda b, i: (b, 0, 0)),
        scratch_shapes=[pltpu.VMEM((8, hop), jnp.float32),             # y_hat carry row(s)
                        pltpu.VMEM((8, hop), jnp.float32)],            # y carry row(s)
        compiler_params=pltpu.CompilerParams(
            dimension_semantics=("parallel", "arbitrary")),
    )(xh, xy, basis)

    count = B * num_frames * n_freq
    scale = 0.25 if distance_metric == 'l2' else 0.5   # (0.5*dl)^2 / |0.5*dl|
    return jnp.sum(partial_sums) * (scale / count)


def _reference_loss(y_hat, y, *, distance_metric='l2', n_fft=128, hop_length=64):
    """Pure-JAX f32 reference of the same forward pass."""
    y_hat = jnp.squeeze(y_hat, -1).astype(jnp.float32)
    y = jnp.squeeze(y, -1).astype(jnp.float32)
    B, T = y.shape
    num_frames = (T - n_fft) // hop_length + 1
    n_freq = n_fft // 2 + 1

    idx = jnp.arange(num_frames)[:, None] * hop_length + jnp.arange(n_fft)[None, :]
    n = jnp.arange(n_fft, dtype=jnp.float32)
    window = 0.5 * (1.0 - jnp.cos(2.0 * math.pi * n / n_fft))
    k = jnp.arange(n_freq, dtype=jnp.float32)
    ang = -2.0 * math.pi * n[:, None] * k[None, :] / n_fft
    dr, di = jnp.cos(ang), jnp.sin(ang)

    def feats(x):
        fr = x[:, idx] * window                                      # (B, NFrames, n_fft)
        re = jnp.einsum('bfn,nk->bfk', fr, dr)
        im = jnp.einsum('bfn,nk->bfk', fr, di)
        return jnp.sqrt(re * re + im * im + 1e-14)

    d = jnp.log(feats(y_hat)) - jnp.log(feats(y))
    if distance_metric == 'l2':
        return jnp.mean(d * d)
    return jnp.mean(jnp.abs(d))


if __name__ == "__main__":
    key = jax.random.PRNGKey(0)
    k1, k2 = jax.random.split(key)
    B, T = 2, 512
    y_hat = jax.random.normal(k1, (B, T, 1), dtype=jnp.float32)
    y = jax.random.normal(k2, (B, T, 1), dtype=jnp.float32)

    loss_l2 = jax.block_until_ready(
        log_stft_magnitude_loss(y_hat, y, distance_metric='l2'))
    loss_l1 = jax.block_until_ready(
        log_stft_magnitude_loss(y_hat, y, distance_metric='l1'))

    ref_l2 = _reference_loss(y_hat, y, distance_metric='l2')
    ref_l1 = _reference_loss(y_hat, y, distance_metric='l1')

    # bf16 MXU inputs -> slightly looser tolerance than a pure-f32 pipeline.
    assert jnp.allclose(loss_l2, ref_l2, rtol=3e-2, atol=1e-3), (loss_l2, ref_l2)
    assert jnp.allclose(loss_l1, ref_l1, rtol=3e-2, atol=1e-3), (loss_l1, ref_l1)
    print("KERNEL_OK")
</pallas_src>

<mosaic_0001>
module attributes {stable_mosaic.version = 11 : i64} {
  func.func @_loss_kernel(%arg0: i32, %arg1: i32, %arg2: memref<1x8x64xf32, #tpu.memory_space<vmem>>, %arg3: memref<1x8x64xf32, #tpu.memory_space<vmem>>, %arg4: memref<128x128xbf16, #tpu.memory_space<vmem>>, %arg5: memref<1x8x128xf32, #tpu.memory_space<vmem>>, %arg6: memref<8x64xf32, #tpu.memory_space<vmem>>, %arg7: memref<8x64xf32, #tpu.memory_space<vmem>>) attributes {dimension_semantics = [#tpu.dimension_semantics<parallel>, #tpu.dimension_semantics<arbitrary>], iteration_bounds = array<i64: 2, 1>, scalar_prefetch = 0 : i64, scratch_operands = 2 : i64, tpu.core_type = #tpu.core_type<tc>, window_params = [{transform_indices = @transform_0, window_bounds = array<i64: 1, 8, 64>}, {transform_indices = @transform_1, window_bounds = array<i64: 1, 8, 64>}, {pipeline_mode = #tpu.pipeline_mode<synchronous>, transform_indices = @transform_2, window_bounds = array<i64: 128, 128>}, {transform_indices = @transform_3, window_bounds = array<i64: 1, 8, 128>}]} {
    %c0_i32 = arith.constant 0 : i32
    %0 = arith.cmpi eq, %arg1, %c0_i32 : i32
    %1 = arith.extui %0 : i1 to i32
    %c0_i32_0 = arith.constant 0 : i32
    %2 = arith.cmpi ne, %1, %c0_i32_0 : i32
    scf.if %2 {
      %cst_43 = arith.constant 0.000000e+00 : f32
      %79 = vector.broadcast %cst_43 : f32 to vector<1x8x128xf32>
      %c0_44 = arith.constant 0 : index
      %c0_45 = arith.constant 0 : index
      %c0_46 = arith.constant 0 : index
      %80 = vector.load %arg5[%c0_44, %c0_45, %c0_46] : memref<1x8x128xf32, #tpu.memory_space<vmem>>, vector<1x8x128xf32>
      tpu.vector_store %arg5[%c0_44, %c0_45, %c0_46], %79 {strides = array<i32>} : memref<1x8x128xf32, #tpu.memory_space<vmem>>, vector<1x8x128xf32>,
    } else {
    }
    %c0 = arith.constant 0 : index
    %c0_1 = arith.constant 0 : index
    %3 = vector.load %arg4[%c0, %c0_1] : memref<128x128xbf16, #tpu.memory_space<vmem>>, vector<64x128xbf16>
    %c64 = arith.constant 64 : index
    %c0_2 = arith.constant 0 : index
    %4 = vector.load %arg4[%c64, %c0_2] : memref<128x128xbf16, #tpu.memory_space<vmem>>, vector<64x128xbf16>
    %5 = tpu.iota {dimensions = array<i32: 1>} : vector<8x128xi32>
    %6 = tpu.iota {dimensions = array<i32: 0>} : vector<8x128xi32>
    %c0_i32_3 = arith.constant 0 : i32
    %7 = vector.broadcast %c0_i32_3 : i32 to vector<8x128xi32>
    %8 = arith.cmpi ne, %5, %7 : vector<8x128xi32>
    %c64_i32 = arith.constant 64 : i32
    %9 = vector.broadcast %c64_i32 : i32 to vector<8x128xi32>
    %10 = arith.cmpi ne, %5, %9 : vector<8x128xi32>
    %11 = arith.andi %8, %10 : vector<8x128xi1>
    %c65_i32 = arith.constant 65 : i32
    %12 = vector.broadcast %c65_i32 : i32 to vector<8x128xi32>
    %13 = arith.cmpi slt, %5, %12 : vector<8x128xi32>
    %c8_i32 = arith.constant 8 : i32
    %14 = arith.muli %arg1, %c8_i32 : i32
    %c1_i32 = arith.constant 1 : i32
    %15 = arith.subi %14, %c1_i32 : i32
    %cst = arith.constant 0.000000e+00 : f32
    %16 = vector.broadcast %cst : f32 to vector<8x128xf32>
    %c0_4 = arith.constant 0 : index
    %c0_5 = arith.constant 0 : index
    %c0_6 = arith.constant 0 : index
    %17 = vector.load %arg2[%c0_4, %c0_5, %c0_6] : memref<1x8x64xf32, #tpu.memory_space<vmem>>, vector<1x8x64xf32>
    %18 = vector.shape_cast %17 : vector<1x8x64xf32> to vector<8x64xf32>
    %c0_7 = arith.constant 0 : index
    %c0_8 = arith.constant 0 : index
    %c0_9 = arith.constant 0 : index
    %19 = vector.load %arg3[%c0_7, %c0_8, %c0_9] : memref<1x8x64xf32, #tpu.memory_space<vmem>>, vector<1x8x64xf32>
    %20 = vector.shape_cast %19 : vector<1x8x64xf32> to vector<8x64xf32>
    %c7 = arith.constant 7 : index
    %c0_10 = arith.constant 0 : index
    %21 = vector.load %arg6[%c7, %c0_10] : memref<8x64xf32, #tpu.memory_space<vmem>>, vector<1x64xf32>
    %c7_11 = arith.constant 7 : index
    %c0_12 = arith.constant 0 : index
    %22 = vector.load %arg7[%c7_11, %c0_12] : memref<8x64xf32, #tpu.memory_space<vmem>>, vector<1x64xf32>
    %23 = vector.extract_strided_slice %18 {offsets = [0, 0], sizes = [7, 64], strides = [1, 1]} : vector<8x64xf32> to vector<7x64xf32>
    %24 = tpu.concatenate %21, %23 in 0 : vector<1x64xf32>, vector<7x64xf32> -> vector<8x64xf32>
    %25 = vector.extract_strided_slice %20 {offsets = [0, 0], sizes = [7, 64], strides = [1, 1]} : vector<8x64xf32> to vector<7x64xf32>
    %26 = tpu.concatenate %22, %25 in 0 : vector<1x64xf32>, vector<7x64xf32> -> vector<8x64xf32>
    %27 = arith.truncf %24 : vector<8x64xf32> to vector<8x64xbf16>
    %28 = arith.truncf %18 : vector<8x64xf32> to vector<8x64xbf16>
    %cst_13 = arith.constant dense<0.000000e+00> : vector<8x128xf32>
    %29 = tpu.matmul %27, %3, %cst_13 {dimension_numbers = #tpu.dot_dimension_numbers<[1], [0], [0], [1], [0, 0, 1, 1], [], []>} : vector<8x64xbf16>, vector<64x128xbf16>, vector<8x128xf32> -> vector<8x128xf32>
    %cst_14 = arith.constant dense<0.000000e+00> : vector<8x128xf32>
    %30 = tpu.matmul %28, %4, %cst_14 {dimension_numbers = #tpu.dot_dimension_numbers<[1], [0], [0], [1], [0, 0, 1, 1], [], []>} : vector<8x64xbf16>, vector<64x128xbf16>, vector<8x128xf32> -> vector<8x128xf32>
    %31 = arith.addf %29, %30 : vector<8x128xf32>
    %32 = arith.mulf %31, %31 : vector<8x128xf32>
    %c64_i32_15 = arith.constant 64 : i32
    %33 = tpu.dynamic_rotate %32 by %c64_i32_15 dim 1 : vector<8x128xf32>, i32 -> vector<8x128xf32>
    %cst_16 = arith.constant 0.000000e+00 : f32
    %34 = vector.broadcast %cst_16 : f32 to vector<8x128xf32>
    %35 = arith.select %11, %33, %34 : vector<8x128xi1>, vector<8x128xf32>
    %36 = arith.addf %32, %35 : vector<8x128xf32>
    %cst_17 = arith.constant 9.99999982E-15 : f32
    %37 = vector.broadcast %cst_17 : f32 to vector<8x128xf32>
    %38 = arith.addf %36, %37 : vector<8x128xf32>
    %39 = arith.truncf %26 : vector<8x64xf32> to vector<8x64xbf16>
    %40 = arith.truncf %20 : vector<8x64xf32> to vector<8x64xbf16>
    %cst_18 = arith.constant dense<0.000000e+00> : vector<8x128xf32>
    %41 = tpu.matmul %39, %3, %cst_18 {dimension_numbers = #tpu.dot_dimension_numbers<[1], [0], [0], [1], [0, 0, 1, 1], [], []>} : vector<8x64xbf16>, vector<64x128xbf16>, vector<8x128xf32> -> vector<8x128xf32>
    %cst_19 = arith.constant dense<0.000000e+00> : vector<8x128xf32>
    %42 = tpu.matmul %40, %4, %cst_19 {dimension_numbers = #tpu.dot_dimension_numbers<[1], [0], [0], [1], [0, 0, 1, 1], [], []>} : vector<8x64xbf16>, vector<64x128xbf16>, vector<8x128xf32> -> vector<8x128xf32>
    %43 = arith.addf %41, %42 : vector<8x128xf32>
    %44 = arith.mulf %43, %43 : vector<8x128xf32>
    %c64_i32_20 = arith.constant 64 : i32
    %45 = tpu.dynamic_rotate %44 by %c64_i32_20 dim 1 : vector<8x128xf32>, i32 -> vector<8x128xf32>
    %cst_21 = arith.constant 0.000000e+00 : f32
    %46 = vector.broadcast %cst_21 : f32 to vector<8x128xf32>
    %47 = arith.select %11, %45, %46 : vector<8x128xi1>, vector<8x128xf32>
    %48 = arith.addf %44, %47 : vector<8x128xf32>
    %cst_22 = arith.constant 9.99999982E-15 : f32
    %49 = vector.broadcast %cst_22 : f32 to vector<8x128xf32>
    %50 = arith.addf %48, %49 : vector<8x128xf32>
    %51 = tpu.reciprocal %50 {approx = true} : vector<8x128xf32> -> vector<8x128xf32>
    %52 = arith.mulf %38, %51 : vector<8x128xf32>
    %53 = math.log %52 : vector<8x128xf32>
    %54 = arith.mulf %53, %53 : vector<8x128xf32>
    %c0_i32_23 = arith.constant 0 : i32
    %55 = arith.addi %15, %c0_i32_23 : i32
    %56 = vector.broadcast %55 : i32 to vector<8x128xi32>
    %57 = arith.addi %56, %6 : vector<8x128xi32>
    %c0_i32_24 = arith.constant 0 : i32
    %58 = vector.broadcast %c0_i32_24 : i32 to vector<8x128xi32>
    %59 = arith.cmpi sge, %57, %58 : vector<8x128xi32>
    %c7_i32 = arith.constant 7 : i32
    %60 = vector.broadcast %c7_i32 : i32 to vector<8x128xi32>
    %61 = arith.cmpi slt, %57, %60 : vector<8x128xi32>
    %62 = arith.andi %59, %61 : vector<8x128xi1>
    %63 = arith.andi %62, %13 : vector<8x128xi1>
    %cst_25 = arith.constant 0.000000e+00 : f32
    %64 = vector.broadcast %cst_25 : f32 to vector<8x128xf32>
    %65 = arith.select %63, %54, %64 : vector<8x128xi1>, vector<8x128xf32>
    %66 = vector.shape_cast %65 : vector<8x128xf32> to vector<1x8x128xf32>
    %cst_26 = arith.constant dense<0.000000e+00> : vector<8x128xf32>
    %67 = vector.multi_reduction <add>, %66, %cst_26 [0] : vector<1x8x128xf32> to vector<8x128xf32>
    %68 = arith.addf %16, %67 : vector<8x128xf32>
    %c0_27 = arith.constant 0 : index
    %c0_28 = arith.constant 0 : index
    %c0_29 = arith.constant 0 : index
    %69 = vector.load %arg5[%c0_27, %c0_28, %c0_29] : memref<1x8x128xf32, #tpu.memory_space<vmem>>, vector<1x8x128xf32>
    %70 = vector.shape_cast %68 : vector<8x128xf32> to vector<1x8x128xf32>
    %71 = arith.addf %69, %70 : vector<1x8x128xf32>
    %c0_30 = arith.constant 0 : index
    %c0_31 = arith.constant 0 : index
    %c0_32 = arith.constant 0 : index
    %72 = vector.load %arg5[%c0_30, %c0_31, %c0_32] : memref<1x8x128xf32, #tpu.memory_space<vmem>>, vector<1x8x128xf32>
    tpu.vector_store %arg5[%c0_30, %c0_31, %c0_32], %71 {strides = array<i32>} : memref<1x8x128xf32, #tpu.memory_space<vmem>>, vector<1x8x128xf32>,
    %c0_33 = arith.constant 0 : index
    %c0_34 = arith.constant 0 : index
    %c0_35 = arith.constant 0 : index
    %73 = vector.load %arg2[%c0_33, %c0_34, %c0_35] : memref<1x8x64xf32, #tpu.memory_space<vmem>>, vector<1x8x64xf32>
    %74 = vector.shape_cast %73 : vector<1x8x64xf32> to vector<8x64xf32>
    %c0_36 = arith.constant 0 : index
    %c0_37 = arith.constant 0 : index
    %75 = vector.load %arg6[%c0_36, %c0_37] : memref<8x64xf32, #tpu.memory_space<vmem>>, vector<8x64xf32>
    tpu.vector_store %arg6[%c0_36, %c0_37], %74 {strides = array<i32>} : memref<8x64xf32, #tpu.memory_space<vmem>>, vector<8x64xf32>,
    %c0_38 = arith.constant 0 : index
    %c0_39 = arith.constant 0 : index
    %c0_40 = arith.constant 0 : index
    %76 = vector.load %arg3[%c0_38, %c0_39, %c0_40] : memref<1x8x64xf32, #tpu.memory_space<vmem>>, vector<1x8x64xf32>
    %77 = vector.shape_cast %76 : vector<1x8x64xf32> to vector<8x64xf32>
    %c0_41 = arith.constant 0 : index
    %c0_42 = arith.constant 0 : index
    %78 = vector.load %arg7[%c0_41, %c0_42] : memref<8x64xf32, #tpu.memory_space<vmem>>, vector<8x64xf32>
    tpu.vector_store %arg7[%c0_41, %c0_42], %77 {strides = array<i32>} : memref<8x64xf32, #tpu.memory_space<vmem>>, vector<8x64xf32>,
    return
  }
  func.func @transform_0(%arg0: i32, %arg1: i32) -> (i32, i32, i32) {
    %c0_i32 = arith.constant 0 : i32
    %c0_i32_0 = arith.constant 0 : i32
    return %arg0, %arg1, %c0_i32 : i32, i32, i32
  }
  func.func @transform_1(%arg0: i32, %arg1: i32) -> (i32, i32, i32) {
    %c0_i32 = arith.constant 0 : i32
    %c0_i32_0 = arith.constant 0 : i32
    return %arg0, %arg1, %c0_i32 : i32, i32, i32
  }
  func.func @transform_2(%arg0: i32, %arg1: i32) -> (i32, i32) {
    %c0_i32 = arith.constant 0 : i32
    %c0_i32_0 = arith.constant 0 : i32
    %c0_i32_1 = arith.constant 0 : i32
    return %c0_i32, %c0_i32_0 : i32, i32
  }
  func.func @transform_3(%arg0: i32, %arg1: i32) -> (i32, i32, i32) {
    %c0_i32 = arith.constant 0 : i32
    %c0_i32_0 = arith.constant 0 : i32
    %c0_i32_1 = arith.constant 0 : i32
    return %arg0, %c0_i32, %c0_i32_0 : i32, i32, i32
  }
}

</mosaic_0001>

<bundles_post_ra>
// kernel: tpu_custom_call.1
= control target key start
LH: loop header
LB: loop body
LE: loop exit
PB: predicated region body
PF: predicated region fallthrough
CT: control target
= control target key end

     0   :  { %s1101_s0 = inlined_call_operand.hbm [shape: f32[2,8,64], index: 0, kind: input, shape index: {}]   ;;  %s1102_s1 = inlined_call_operand.hbm [shape: f32[2,8,64], index: 1, kind: input, shape index: {}]   ;;  %s1103_s2 = inlined_call_operand.hbm [shape: bf16[128,128], index: 2, kind: input, shape index: {}]   ;;  %s1104_s3 = inlined_call_operand.hbm [shape: f32[2,8,128], index: 3, kind: output, shape index: {}]  }
   0x1   :  { %1107 = sst [smem:[#allocation18_spill]] %s1103_s2 }
   0x2   :  { %8 = vsyncpa [#allocation5], 0 }
   0x3   :  { %10 = vsyncpa [#allocation5 + $0x1], 0 }
   0x4   :  { %11 = vsyncpa [#allocation8], 0 }
   0x5   :  { %13 = vsyncpa [#allocation8 + $0x1], 0 }
   0x6   :  { %14 = vsyncpa [#allocation6], 0 }
   0x7   :  { %16 = vsyncpa [#allocation6 + $0x1], 0  ;;  %s938_s12 = smov 0   ;;  %s940_s13 = smov 0  }
   0x8   :  { %s942_s14 = smov 0   ;;  %s944_s15 = smov 0  }
   0x9   :  { %s946_s16 = smov 0   ;;  %s948_s17 = smov 0  }
   0xa LB: > { %1108 = sst [smem:[#allocation15_spill]] %s908_s16  ;;  %s969_s18 = sadd.s32 4294967295, %s912_s17   ;;  %s912_s17 = sphi %s948_s17, %s22_s17   ;;  %s908_s16 = sphi %s946_s16, %s1119_s16   ;;  %s904_s15 = sphi %s944_s15, %s1118_s15   ;;  %s900_s14 = sphi %s942_s14, %s1122_s14   ;;  %s896_s13 = sphi %s940_s13, %s1121_s13   ;;  %s892_s12 = sphi %s938_s12, %s1120_s12  }
   0xb   : > { %p586_p0 = scmp.ge.s32.totalorder %s912_s17, 1  ;;  %p57_p1 = scmp.eq.s32.totalorder %s969_s18, 0 }
   0xc   : > { %p142_p2 = scmp.lt.s32.totalorder %s912_s17, 3  ;;  %s1109_s2 = sld [smem:[#allocation18_spill]] }
   0xd   : > { %s914_s23 = smov [#allocation9]   ;;  %p588_p6 = scmp.ge.s32.totalorder %s912_s17, 2 }
   0xe   : > { %p977_p3 = pnand %p586_p0, %p142_p2  ;;  %s155_s24 = sshll.u32 %s914_s23, 4  ;;  %s156_s24 = int_to_ptr.vmem [resolvable:$true] %s155_s24 }
   0xf   : > { %s915_s25 = smov 64   ;;  %s916_s26 = smov 4  }
  0x10   : > { %p656_p4 = pneg %p977_p3  ;;  %s585_s27 = sadd.s32 4294967294, %s912_s17  }
  0x11   : > { %s34_s28 = sadd.s32 1, %s908_s16  ;;  %s43_s29 = sadd.s32 1, %s900_s14 }
  0x12   : > { %s153_s21 = sshll.u32 %s1109_s2, 4  ;;  %p657_p5 = pnand %p656_p4, %p57_p1  ;;  %s154_s21 = int_to_ptr.hbm [resolvable:$true] %s153_s21 }
  0x13   : > { %p36_p7 = scmp.ge.s32.totalorder %s34_s28, 2  ;;  %p50_p8 = scmp.ne.s32.totalorder %s900_s14, %s896_s13 }
  0x14   : > { %659 = dma.hbm_to_vmem [thread:$0]  (!%p657_p5), %s154_s21, 1024, %s156_s24, [#allocation8], %s915_s25, %s915_s25, %s916_s26  }
  0x15   : > { %p51_p9 = scmp.eq.s32.totalorder %s912_s17, 0  ;;  %p56_p10 = scmp.ne.s32.totalorder %s896_s13, %s892_s12 }
  0x16   : > { %s1124_s28 = smov (%p36_p7, %s34_s28), 0  ;;  %p129_p13 = scmp.eq.s32.totalorder %s969_s18, 1 }
  0x17   : > { %1111 = sst [smem:[#allocation16_spill]] %s1124_s28  ;;  %p996_p11 = por %p51_p9, %p50_p8 }
  0x18   : > { %p1002_p12 = por %p57_p1, %p56_p10  ;;  %s38_s5 = ssub.s32 %s908_s16, %s1124_s28 }
  0x19   : > { %p41_p0 = scmp.eq.s32.totalorder %s38_s5, 0  ;;  %p135_p2 = scmp.eq.s32.totalorder %s585_s27, 1 }
  0x1a   : > { %p1009_p4 = por %p129_p13, %p50_p8  ;;  %p672_p5 = scmp.lt.s32.totalorder %s912_s17, 2 }
  0x1b   : > { %s1015_s7 = scalar_select %p41_p0, %s900_s14, %s43_s29  }
  0x1c   : > { %p1017_p7 = por %p135_p2, %p56_p10  ;;  %s169_s9 = sand.u32 1, %s900_s14  }
  0x1d   : > { %1115 = sst [smem:[#allocation17_spill]] %s1015_s7  ;;  %s589_s10 = sshll.u32 %s169_s9, 3 }
  0x1e   : > { %s590_s11 = sshll.u32 %s908_s16, 3  ;;  %s173_s23 = scalar_lea.vmem [#allocation4], %s589_s10 }
  0x1f   : > { %s178_s21 = scalar_lea.hbm %s1101_s0, %s590_s11  ;;  %s182_s24 = sshll.u32 %s173_s23, 4  ;;  %s183_s24 = int_to_ptr.vmem [resolvable:$true] %s182_s24 }
  0x20   : > { %s180_s25 = sshll.u32 %s178_s21, 4  ;;  %p661_p8 = pnand %p672_p5, %p996_p11  ;;  %s181_s25 = int_to_ptr.hbm [resolvable:$true] %s180_s25 }
  0x21   : > { %s198_s29 = scalar_lea.hbm %s1102_s1, %s590_s11  ;;  %s189_s5 = sand.u32 1, %s912_s17  }
  0x22   : > { %s170_s2 = scalar_lea.sflag [#allocation5], %s169_s9  ;;  %s200_s28 = sshll.u32 %s198_s29, 4  ;;  %s201_s28 = int_to_ptr.hbm [resolvable:$true] %s200_s28 }
  0x23   : > { %663 = dma.hbm_to_vmem [thread:$0]  (!%p661_p8), %s181_s25, 128, %s183_s24, %s170_s2  }
  0x24   : > { %s193_s16 = scalar_lea.vmem [#allocation7], %s589_s10  ;;  %s190_s19 = scalar_lea.sflag [#allocation8], %s189_s5 }
  0x25   : > { %s202_s7 = sshll.u32 %s193_s16, 4  ;;  %211 = sbr.rel (%p977_p3) target bundleno = 346 (0x15a), region = 32  ;;  %s203_s7 = int_to_ptr.vmem [resolvable:$true] %s202_s7 }
  0x26   : > { %666 = dma.hbm_to_vmem [thread:$0]  (!%p661_p8), %s201_s28, 128, %s203_s7, %s190_s19  }
  0x27   : > { %s1035_s30 = sand.u32 (!%p977_p3), 1, %s896_s13  }
  0x28   : > { %s1038_s11 = sshll.u32 (!%p977_p3), %s1035_s30, 3  ;;  %s214_s2 = scalar_lea.sflag (!%p977_p3), [#allocation5], %s1035_s30 }
  0x29   : > { %s217_s9 = scalar_lea.vmem (!%p977_p3), [#allocation4], %s1038_s11 }
  0x2a   : > { %875 = dma.done.wait (%p1002_p12), %s214_s2, 128  }
  0x2b   : > { %877 = vsyncadd (%p1002_p12), %s214_s2, 4294967168  ;;  %s223_s16 = sand.u32 1, %s969_s18   ;;  %s227_s28 = scalar_lea.vmem [#allocation7], %s1038_s11 }
  0x2c   : > { %s224_s22 = scalar_lea.sflag [#allocation8], %s223_s16 }
  0x2d   : > { %879 = dma.done.wait (%p1002_p12), %s224_s22, 128  }
  0x2e   : > { %881 = vsyncadd (%p1002_p12), %s224_s22, 4294967168 }
  0x2f   : > { %883 = dma.done.wait (%p57_p1), [#allocation8], 1024  }
  0x30   : > { %885 = vsyncadd (%p57_p1), [#allocation8], 4294966272  ;;  %v645_v0 = vld [vmem:[#allocation9 + $0x38] sm:$0xff]  ;;  %v644_v2 = vld [vmem:[#allocation9 + $0x30] sm:$0xff]  ;;  %vm332_vm0 = vcmask 523264   ;;  %vm300_vm1 = vcmask 1040384   ;;  %v283_v32 = vlaneseq }
  0x31   : > { %v641_v1 = vld [vmem:[#allocation9 + $0x18] sm:$0xff]  ;;  %404 = vmatpush.bf16.msra.mxu2 %v645_v0  ;;  %v640_v3 = vld [vmem:[#allocation9 + $0x10] sm:$0xff]  ;;  %340 = vmatpush.bf16.msra.mxu0 %v645_v0  ;;  %v293_v6 = vld [vmem:[%s217_s9] sm:$0xff]  ;;  %s917_s18 = smov 64   ;;  %s635_s4 = sshll.u32 %s904_s15, 3 }
  0x32   : > { %420 = vmatpush.bf16.msra.mxu3 %v641_v1  ;;  %380 = vmatpush.bf16.msra.mxu1 %v641_v1  ;;  %v294_v4 = vld [vmem:[%s227_s28] sm:$0xff]  ;;  %v643_v8 = vld [vmem:[#allocation9 + $0x28] sm:$0xff]  ;;  %v298_v11 = vrot.slane %v293_v6, 7  ;;  %v642_v12 = vld [vmem:[#allocation9 + $0x20] sm:$0xff]  ;;  %v307_v18 = vpack.c.bf16 %v293_v6, %v293_v6  ;;  %v284_v33 = vand.u32 127, %v283_v32  ;;  %v286_v43 = vshrl.u32 %v283_v32, 7  ;;  %s467_s20 = scalar_lea.hbm %s1104_s3, %s635_s4 }
  0x33   : > { %v296_v5 = vld [vmem:[#allocation3 + $0x7] sm:$0x1]  ;;  %v295_v7 = vld [vmem:[#allocation2 + $0x7] sm:$0x1]  ;;  %v639_v9 = vld [vmem:[#allocation9 + $0x8] sm:$0xff]  ;;  %v303_v10 = vrot.slane %v294_v4, 7  ;;  %v396_v16 = vpack.c.bf16 %v294_v4, %v294_v4 }
  0x34   : > { %455 = vst.msk [vmem:[#allocation3] sm:$0xff] %vm332_vm0, %v294_v4  ;;  %v638_v13 = vld [vmem:[#allocation9] sm:$0xff]  ;;  %v301_v15 = vsel %vm300_vm1, %v295_v7, %v298_v11  ;;  %vm287_vm2 = vcmp.ne.s32.totalorder %v284_v33, 0  ;;  %vm288_vm3 = vcmp.ne.s32.totalorder %v284_v33, 64  ;;  %v441_v45 = vadd.s32 4294967295, %v286_v43  ;;  %s260_s21 = scalar_lea.vmem [#allocation10], %s1038_s11 }
  0x35   : > { %453 = vst.msk [vmem:[#allocation2] sm:$0xff] %vm332_vm0, %v293_v6  ;;  %405 = vmatpush.bf16.msra.mxu2 %v644_v2  ;;  %341 = vmatpush.bf16.msra.mxu0 %v644_v2  ;;  %v305_v14 = vsel %vm300_vm1, %v296_v5, %v303_v10  ;;  %v306_v19 = vpack.c.bf16 %v301_v15, %v301_v15  ;;  %vm289_vm4 = vmand %vm287_vm2, %vm288_vm3  ;;  %vm290_vm5 = vcmp.lt.s32.totalorder %v284_v33, 65  ;;  %s469_s23 = sshll.u32 %s260_s21, 4  ;;  %s471_s24 = sshll.u32 %s467_s20, 4  ;;  %s470_s23 = int_to_ptr.vmem [resolvable:$true] %s469_s23  ;;  %s472_s24 = int_to_ptr.hbm [resolvable:$true] %s471_s24 }
  0x36   : > { %421 = vmatpush.bf16.msra.mxu3 %v640_v3  ;;  %381 = vmatpush.bf16.msra.mxu1 %v640_v3  ;;  %v395_v17 = vpack.c.bf16 %v305_v14, %v305_v14  ;;  %vm442_vm6 = vcmp.ge.s32.totalorder %v441_v45, 0  ;;  %s457_s25 = scalar_lea.sflag [#allocation6], %s1035_s30  ;;  %s836_s15 = sshra.s32 %s472_s24, 4  ;;  %s837_s15 = int_to_ptr.hbm [resolvable:$true] %s836_s15 }
  0x37   : > { %vm445_vm7 = vmand %vm442_vm6, %vm290_vm5  ;;  %s838_s26 = scalar_lea.hbm %s837_s15, 8  ;;  %s842_s5 = scalar_lea.hbm %s1104_s3, 16 }
  0x38   : > { %p839_p1 = scmp.ne.s32.totalorder %s837_s15, %s838_s26  ;;  %p843_p10 = scmp.lt.s32.totalorder %s837_s15, %s1104_s3 }
  0x39   : > { %406 = vmatpush.bf16.msra.mxu2 %v643_v8  ;;  %342 = vmatpush.bf16.msra.mxu0 %v643_v8  ;;  %p844_p11 = scmp.lt.s32.totalorder %s842_s5, %s838_s26 }
  0x3a   : > { %422 = vmatpush.bf16.msra.mxu3 %v639_v9  ;;  %382 = vmatpush.bf16.msra.mxu1 %v639_v9  ;;  %p840_p3 = pnand %p839_p1, %p1009_p4 }
  0x3b   : > { %p845_p12 = por %p844_p11, %p843_p10 }
  0x3c   : > { %p841_p9 = pneg %p840_p3 }
  0x3d   : > { %407 = vmatpush.bf16.msra.mxu2 %v642_v12  ;;  %343 = vmatpush.bf16.msra.mxu0 %v642_v12 }
  0x3e   : > { %423 = vmatpush.bf16.msra.mxu3 %v638_v13  ;;  %383 = vmatpush.bf16.msra.mxu1 %v638_v13  ;;  %p846_p13 = pnand %p845_p12, %p841_p9 }
  0x40   : > { %632 = vmatmul.msk.bf16.vlgmr.msra.gmra.mxu2 %vm332_vm0, %v396_v16  ;;  %614 = vmatmul.msk.bf16.vlgmr.msra.gmra.mxu0 %vm332_vm0, %v307_v18 }
  0x41   : > { %633 = vmatmul.msk.bf16.vlgmr.msra.gmra.mxu3 %vm332_vm0, %v395_v17  ;;  %631 = vmatmul.msk.bf16.vlgmr.msra.gmra.mxu1 %vm332_vm0, %v306_v19 }
  0xbd   : > { %v345_v20 = vpop.f32.mrf.mxu0 }
  0xbe   : > { %v385_v21 = vpop.f32.mrf.mxu1 }
  0xbf   : > { %v386_v28 = vadd.f32 %v385_v21, %v345_v20 }
  0xc1   : > { %v389_v31 = vmul.f32 %v386_v28, %v386_v28 }
  0xc3   : > { %v409_v22 = vpop.f32.mrf.mxu2 }
  0xc4   : > { %v425_v23 = vpop.f32.mrf.mxu3 }
  0xc5   : > { %v426_v24 = vadd.f32 %v425_v23, %v409_v22  ;;  %v347_v26 = vpop.f32.mrf.mxu0 }
  0xc6   : > { %v387_v27 = vpop.f32.mrf.mxu1 }
  0xc7   : > { %v429_v25 = vmul.f32 %v426_v24, %v426_v24 }
  0xc9   : > { %430 = vrot.lane.b32.xlu0 %v429_v25, %s917_s18 }
  0xcb   : > { %v411_v29 = vpop.f32.mrf.mxu2 }
  0xcc   : > { %v427_v30 = vpop.f32.mrf.mxu3 }
  0xd1   : > { %390 = vrot.lane.b32.xlu0 %v389_v31, %s917_s18 }
 0x13b   : > { %v431_v34 = vpop.permute.xlu0 %430 }
 0x13c   : > { %v432_v35 = vsel %vm289_vm4, %v431_v34, 0.0 }
 0x13d   : > { %v433_v36 = vadd.f32 %v432_v35, %v429_v25 }
 0x13f   : > { %v434_v37 = vadd.f32 1e-14, %v433_v36 }
 0x141   : > { %728 = vrcp.f32 %v434_v37 }
 0x143   : > { %v391_v38 = vpop.permute.xlu0 %390 }
 0x144   : > { %v392_v39 = vsel %vm289_vm4, %v391_v38, 0.0 }
 0x145   : > { %v393_v40 = vadd.f32 %v392_v39, %v389_v31 }
 0x147   : > { %v729_v41 = vpop.eup %728  ;;  %v394_v42 = vadd.f32 1e-14, %v393_v40 }
 0x149   : > { %v436_v44 = vmul.f32 %v729_v41, %v394_v42 }
 0x14b   : > { %730 = vlog2.f32 %v436_v44 }
 0x151   : > { %v731_v46 = vpop.eup %730 }
 0x152   : > { %v438_v47 = vmul.f32 0.6931472, %v731_v46 }
 0x154   : > { %v439_v48 = vmul.f32 %v438_v47, %v438_v47 }
 0x156   : > { %v446_v49 = vsel %vm445_vm7, %v439_v48, 0.0 }
 0x157   : > { %451 = vst [vmem:[%s260_s21] sm:$0xff] %v446_v49 }
 0x158   : > { %849 = shalt.err (!%p846_p13)
}
 0x159   : > { %654 = dma.vmem_to_hbm [thread:$0]  (%p1009_p4), %s470_s23, 128, %s472_s24, %s457_s25  }
 0x15a PF: > { %s483_s30 = sand.u32 1, %s892_s12   ;;  %p668_p0 = pnand %p588_p6, %p1017_p7 }
 0x15b   : > { %s484_s2 = scalar_lea.sflag [#allocation6], %s483_s30 }
 0x15c   : > { %p669_p2 = pneg %p668_p0 }
 0x15e   : > { %887 = dma.done.wait (%p669_p2), %s484_s2, 128  }
 0x15f   : > { %889 = vsyncadd (%p669_p2), %s484_s2, 4294967168  ;;  %s22_s17 = sadd.s32 1, %s912_s17   ;;  %s1117_s9 = sld [smem:[#allocation17_spill]] }
 0x160   : > { %p19_p5 = scmp.ge.s32.totalorder %s22_s17, 4   ;;  %s1118_s15 = sld [smem:[#allocation15_spill]] }
 0x161   : > { %s1119_s16 = sld [smem:[#allocation16_spill]]  ;;  %s1120_s12 = smov %s896_s13 }
 0x162   : > { %s1121_s13 = smov %s900_s14  ;;  %21 = sbr.rel (!%p19_p5) target bundleno = 10 (0xa), region = 98 }
 0x165   : > { %s1122_s14 = smov %s1117_s9 }
 0x167   :  { %490 = vsyncpa [#allocation5], 1 }
 0x168   :  { %492 = vsyncpa [#allocation5 + $0x1], 1 }
 0x169   :  { %493 = vsyncpa [#allocation8], 1 }
 0x16a   :  { %495 = vsyncpa [#allocation8 + $0x1], 1 }
 0x16b   :  { %496 = vsyncpa [#allocation6], 1 }
 0x16c   :  { %498 = vsyncpa [#allocation6 + $0x1], 1 }

</bundles_post_ra>
